<compile_context>
chip_gen: v7x
topology: tpu7x:2x2x1
jax: 0.10.0
libtpu: 0.0.40
codegen_flags: <defaults>
</compile_context>

<pallas_src>
import math
from functools import partial

import jax
import jax.numpy as jnp
from jax import lax
from jax.experimental import pallas as pl
from jax.experimental.pallas import tpu as pltpu


def _round_up(x: int, m: int) -> int:
    return ((x + m - 1) // m) * m


def _cdiv(a: int, b: int) -> int:
    return (a + b - 1) // b


def _sublane(dtype) -> int:
    """Minimum sublane multiple for the second-to-last block dim, per dtype packing."""
    itemsize = jnp.dtype(dtype).itemsize
    return {4: 8, 2: 16, 1: 32}.get(itemsize, 8)


def _vmem_budget_bytes() -> int:
    """Physical VMEM minus ~25% headroom for compiler scratch; conservative fallback."""
    cap = None
    try:
        cap = getattr(pltpu.get_tpu_info(), "vmem_capacity_bytes", None)
    except Exception:
        cap = None
    if not cap:
        cap = 64 * 1024 * 1024  # v7x-sized fallback (safe on all generations)
    return int(0.75 * cap)


# ----------------------------------------------------------------------------- kernels


def _linear_acc_kernel(x_ref, w_ref, o_ref, acc_ref):
    # x_ref: (tm, tk), w_ref: (tn, tk), o_ref: (tm, tn), acc_ref: (tm, tn) f32
    # Contract last axis of x with last axis of W (native (N,K) weight layout).
    part = lax.dot_general(
        x_ref[...],
        w_ref[...],
        dimension_numbers=(((1,), (1,)), ((), ())),
        preferred_element_type=jnp.float32,
    )

    @pl.when(pl.program_id(2) == 0)
    def _():
        acc_ref[...] = part          # direct assign: no zero-fill store pass

    @pl.when(pl.program_id(2) > 0)
    def _():
        acc_ref[...] += part

    @pl.when(pl.program_id(2) == pl.num_programs(2) - 1)
    def _():
        o_ref[...] = acc_ref[...].astype(o_ref.dtype)


def _linear_singlek_kernel(x_ref, w_ref, o_ref):
    # Whole K fits one step: no accumulator scratch, no epilogue copy.
    o_ref[...] = lax.dot_general(
        x_ref[...],
        w_ref[...],
        dimension_numbers=(((1,), (1,)), ((), ())),
        preferred_element_type=jnp.float32,
    ).astype(o_ref.dtype)


# ----------------------------------------------------------------------------- wrapper


def linear_forward(
    x: jax.Array,
    weight: jax.Array,
    *,
    tm: int = 512,
    tn: int = 512,
    tk: int = 1024,
    compute_dtype=None,
) -> jax.Array:
    """Apply y = x @ weight.T, matching torch.einsum('...ij,kj', x, weight).

    compute_dtype: optionally cast x/W (e.g. to jnp.bfloat16) before the kernel for
    2-4x MXU throughput and half the HBM traffic; accumulation stays f32. Numerics
    differ from the f32 reference — caller opts in explicitly.
    """
    *lead, K = x.shape
    N, K_w = weight.shape
    assert K == K_w, "in_features mismatch"

    out_dtype = x.dtype
    if compute_dtype is not None:
        x = x.astype(compute_dtype)
        weight = weight.astype(compute_dtype)

    x2d = x.reshape(-1, K)
    M = x2d.shape[0]

    sub = _sublane(x2d.dtype)
    lane = 128

    # Adapt tiles to small problems while respecting TPU alignment (dtype-aware sublane).
    tm = min(tm, _round_up(M, sub))
    tn = min(tn, _round_up(N, lane))
    tk = min(tk, _round_up(K, lane))

    # Megacore (v7x has 2 TCs): ensure >= 2 parallel output tiles when the shape allows.
    if _cdiv(M, tm) * _cdiv(N, tn) == 1:
        if N >= 2 * lane:
            tn = _round_up(_cdiv(N, 2), lane)
        elif M >= 2 * sub:
            tm = _round_up(_cdiv(M, 2), sub)

    M_pad = _round_up(M, tm)
    N_pad = _round_up(N, tn)
    K_pad = _round_up(K, tk)

    # Pad only when a dim is not tile-aligned. For real model dims (multiples of
    # 128/256) this branch is never taken; weight padding belongs at param init.
    if (M_pad, K_pad) != (M, K):
        x2d = jnp.pad(x2d, ((0, M_pad - M), (0, K_pad - K)))
    w = weight
    if (N_pad, K_pad) != (N, K):
        w = jnp.pad(w, ((0, N_pad - N), (0, K_pad - K)))

    m_tiles = M_pad // tm
    n_tiles = N_pad // tn
    k_steps = K_pad // tk

    in_itemsize = jnp.dtype(x2d.dtype).itemsize
    out_itemsize = jnp.dtype(out_dtype).itemsize

    # VMEM footprint: double-buffered x/W tiles + double-buffered out tile (+ f32 acc).
    vmem_need = (
        2 * (tm * tk + tn * tk) * in_itemsize
        + 2 * tm * tn * out_itemsize
        + (tm * tn * 4 if k_steps > 1 else 0)
    )
    vmem_budget = _vmem_budget_bytes()
    vmem_limit = int(min(max(2 * vmem_need, 32 * 1024 * 1024), vmem_budget))
    vmem_limit = max(vmem_limit, vmem_need + (2 << 20))

    cost = pl.CostEstimate(
        flops=2 * M_pad * N_pad * K_pad,
        transcendentals=0,
        bytes_accessed=(
            x2d.size * in_itemsize * n_tiles        # x re-streamed per N tile
            + w.size * in_itemsize * m_tiles        # W re-streamed per M tile
            + M_pad * N_pad * out_itemsize
        ),
    )

    if k_steps == 1:
        kernel = _linear_singlek_kernel
        grid = (m_tiles, n_tiles)
        in_specs = [
            pl.BlockSpec((tm, tk), lambda i, j: (i, 0)),
            pl.BlockSpec((tn, tk), lambda i, j: (j, 0)),
        ]
        out_specs = pl.BlockSpec((tm, tn), lambda i, j: (i, j))
        scratch_shapes = []
        dim_sem = ("parallel", "parallel")
    else:
        kernel = _linear_acc_kernel
        grid = (m_tiles, n_tiles, k_steps)
        in_specs = [
            pl.BlockSpec((tm, tk), lambda i, j, k: (i, k)),  # x row/K tile
            pl.BlockSpec((tn, tk), lambda i, j, k: (j, k)),  # W (N,K) tile, no transpose
        ]
        out_specs = pl.BlockSpec((tm, tn), lambda i, j, k: (i, j))
        scratch_shapes = [pltpu.VMEM((tm, tn), jnp.float32)]
        dim_sem = ("parallel", "parallel", "arbitrary")

    out = pl.pallas_call(
        kernel,
        out_shape=jax.ShapeDtypeStruct((M_pad, N_pad), out_dtype),
        grid_spec=pltpu.PrefetchScalarGridSpec(
            num_scalar_prefetch=0,
            grid=grid,
            in_specs=in_specs,
            out_specs=out_specs,
            scratch_shapes=scratch_shapes,
        ),
        compiler_params=pltpu.CompilerParams(
            dimension_semantics=dim_sem,
            vmem_limit_bytes=vmem_limit,
        ),
        cost_estimate=cost,
    )(x2d, w)

    out = out[:M, :N]
    return out.reshape(*lead, N)


# ----------------------------------------------------------------------------- init


def init_linear_weight(key, in_features: int, out_features: int,
                       std: float | None = None, dtype=jnp.float32) -> jax.Array:
    """Mirror the torch module literally:
    trunc_normal_(weight, mean=0, std=std, a=-3*sigma, b=3*sigma) with sigma=sqrt(std),
    i.e. samples from N(0, std^2) truncated to [-3*sqrt(std), 3*sqrt(std)]."""
    if std is None:
        std = 2.0 / (in_features + out_features)
    sigma = math.sqrt(std)
    # truncated_normal samples a standard normal truncated to [lower, upper];
    # scaling by std reproduces N(0, std^2) truncated at +/- 3*sigma, as in the spec.
    lower = -3.0 * sigma / std
    upper = 3.0 * sigma / std
    w = jax.random.truncated_normal(
        key, lower, upper, (out_features, in_features), dtype=jnp.float32
    ) * std
    return w.astype(dtype)


if __name__ == "__main__":
    key = jax.random.PRNGKey(0)
    k_x, k_w = jax.random.split(key)

    batch, seq, in_features, out_features = 2, 8, 32, 64

    x = jax.random.normal(k_x, (batch, seq, in_features), dtype=jnp.float32)
    weight = init_linear_weight(k_w, in_features, out_features)

    y = linear_forward(x, weight)
    y = jax.block_until_ready(y)

    # Reference check against plain JAX einsum (same semantics as torch forward).
    y_ref = jnp.einsum("...ij,kj->...ik", x, weight)
    assert y.shape == (batch, seq, out_features)
    assert jnp.allclose(y, y_ref, atol=1e-5, rtol=1e-5), "mismatch vs reference"

    print("KERNEL_OK")
</pallas_src>

<mosaic_0001>
module attributes {stable_mosaic.version = 11 : i64} {
  func.func @_linear_singlek_kernel(%arg0: i32, %arg1: i32, %arg2: memref<8x128xf32, #tpu.memory_space<vmem>>, %arg3: memref<128x128xf32, #tpu.memory_space<vmem>>, %arg4: memref<8x128xf32, #tpu.memory_space<vmem>>) attributes {dimension_semantics = [#tpu.dimension_semantics<parallel>, #tpu.dimension_semantics<parallel>], iteration_bounds = array<i64: 2, 1>, scalar_prefetch = 0 : i64, scratch_operands = 0 : i64, tpu.core_type = #tpu.core_type<tc>, window_params = [{transform_indices = @transform_0, window_bounds = array<i64: 8, 128>}, {transform_indices = @transform_1, window_bounds = array<i64: 128, 128>}, {transform_indices = @transform_2, window_bounds = array<i64: 8, 128>}]} {
    %c0 = arith.constant 0 : index
    %c0_0 = arith.constant 0 : index
    %0 = vector.load %arg2[%c0, %c0_0] : memref<8x128xf32, #tpu.memory_space<vmem>>, vector<8x128xf32>
    %c0_1 = arith.constant 0 : index
    %c0_2 = arith.constant 0 : index
    %1 = vector.load %arg3[%c0_1, %c0_2] : memref<128x128xf32, #tpu.memory_space<vmem>>, vector<128x128xf32>
    %cst = arith.constant dense<0.000000e+00> : vector<8x128xf32>
    %2 = tpu.matmul %0, %1, %cst {dimension_numbers = #tpu.dot_dimension_numbers<[1], [1], [0], [0], [0, 0, 1, 0], [], []>} : vector<8x128xf32>, vector<128x128xf32>, vector<8x128xf32> -> vector<8x128xf32>
    %c0_3 = arith.constant 0 : index
    %c0_4 = arith.constant 0 : index
    %3 = vector.load %arg4[%c0_3, %c0_4] : memref<8x128xf32, #tpu.memory_space<vmem>>, vector<8x128xf32>
    tpu.vector_store %arg4[%c0_3, %c0_4], %2 {strides = array<i32>} : memref<8x128xf32, #tpu.memory_space<vmem>>, vector<8x128xf32>,
    return
  }
  func.func @transform_0(%arg0: i32, %arg1: i32) -> (i32, i32) {
    %c0_i32 = arith.constant 0 : i32
    %c0_i32_0 = arith.constant 0 : i32
    return %arg0, %c0_i32 : i32, i32
  }
  func.func @transform_1(%arg0: i32, %arg1: i32) -> (i32, i32) {
    %c0_i32 = arith.constant 0 : i32
    %c0_i32_0 = arith.constant 0 : i32
    return %arg1, %c0_i32 : i32, i32
  }
  func.func @transform_2(%arg0: i32, %arg1: i32) -> (i32, i32) {
    %c0_i32 = arith.constant 0 : i32
    return %arg0, %arg1 : i32, i32
  }
}

</mosaic_0001>

<bundles_post_ra>
// kernel: tpu_custom_call.1
= control target key start
LH: loop header
LB: loop body
LE: loop exit
PB: predicated region body
PF: predicated region fallthrough
CT: control target
= control target key end

     0   :  { %7 = vsyncpa [#allocation3], 0  ;;  %s950_s0 = inlined_call_operand.hbm [shape: f32[16,128], index: 0, kind: input, shape index: {}]   ;;  %s951_s1 = inlined_call_operand.hbm [shape: f32[128,128], index: 1, kind: input, shape index: {}]   ;;  %s952_s2 = inlined_call_operand.hbm [shape: f32[16,128], index: 2, kind: output, shape index: {}]  }
   0x1   :  { %9 = vsyncpa [#allocation3 + $0x1], 0 }
   0x2   :  { %10 = vsyncpa [#allocation6], 0 }
   0x3   :  { %11 = vsyncpa [#allocation4], 0 }
   0x4   :  { %13 = vsyncpa [#allocation4 + $0x1], 0  ;;  %s729_s9 = smov 0   ;;  %s731_s10 = smov 0  }
   0x5   :  { %s733_s11 = smov 0   ;;  %s735_s12 = smov 0  }
   0x6   :  { %s737_s13 = smov 0   ;;  %s739_s14 = smov 0  }
   0x7 LB: > { %s391_s15 = sadd.s32 4294967295, %s704_s14   ;;  %s392_s16 = sadd.s32 4294967294, %s704_s14   ;;  %s704_s14 = sphi %s739_s14, %s19_s14   ;;  %s700_s13 = sphi %s737_s13, %s976_s13   ;;  %s696_s12 = sphi %s735_s12, %s975_s12   ;;  %s692_s11 = sphi %s733_s11, %s974_s11   ;;  %s688_s10 = sphi %s731_s10, %s973_s10   ;;  %s684_s9 = sphi %s729_s9, %s972_s9  }
   0x8   : > { %p51_p0 = scmp.ne.s32.totalorder %s688_s10, %s684_s9  ;;  %p763_p1 = scmp.eq.s32.totalorder %s391_s15, 0 }
   0x9   : > { %p767_p2 = scmp.eq.s32.totalorder %s391_s15, 1  ;;  %p109_p3 = scmp.eq.s32.totalorder %s392_s16, 1 }
   0xa   : > { %s957_s17 = scalar_select %p763_p1, 1, 0 }
   0xb   : > { %s958_s18 = scalar_select %p767_p2, 1, 0 }
   0xc   : > { %p773_p4 = por %p763_p1, %p51_p0  ;;  %p393_p5 = scmp.ge.s32.totalorder %s704_s14, 1 }
   0xd   : > { %p778_p6 = por %p109_p3, %p51_p0  ;;  %p116_p7 = scmp.lt.s32.totalorder %s704_s14, 3 }
   0xe   : > { %s959_s19 = scalar_select %p773_p4, 1, 0 }
   0xf   : > { %s960_s20 = scalar_select %p778_p6, 1, 0 }
  0x10   : > { %p783_p8 = pnand %p393_p5, %p116_p7  ;;  %s706_s22 = smov [#allocation5]  }
  0x11   : > { %s131_s23 = sshll.u32 %s706_s22, 4  ;;  %s31_s25 = sadd.s32 1, %s700_s13  ;;  %s132_s23 = int_to_ptr.vmem [resolvable:$true] %s131_s23 }
  0x12   : > { %s961_s21 = scalar_select %p783_p8, 1, 0 }
  0x13   : > { %p490_p9 = pneg %p783_p8  ;;  %s560_s28 = scalar_lea.hbm %s951_s1, 2048 }
  0x14   : > { %p561_p12 = scmp.ne.s32.totalorder %s951_s1, %s560_s28  ;;  %p567_p5 = scmp.lt.u32.totalorder %s560_s28, %s951_s1 }
  0x15   : > { %p792_p11 = pnand %p490_p9, %p763_p1 }
  0x17   : > { %p562_p13 = pneg %p792_p11 }
  0x19   : > { %p563_p0 = pnand %p562_p13, %p561_p12 }
  0x1b   : > { %p564_p3 = pneg %p563_p0 }
  0x1d   : > { %p569_p7 = pnand %p567_p5, %p564_p3 }
  0x1f   : > { %572 = shalt.err (!%p569_p7)
}
  0x20   : > { %s573_s5 = scalar_lea.vmem %s132_s23, 2048  ;;  %p581_p1 = scmp.lt.s32.totalorder %s132_s23, %s132_s23 }
  0x21   : > { %p574_p9 = scmp.ne.s32.totalorder %s132_s23, %s573_s5  ;;  %p582_p4 = scmp.lt.s32.totalorder %s573_s5, %s573_s5 }
  0x23   : > { %p576_p10 = pnand %p574_p9, %p562_p13  ;;  %p583_p8 = por %p582_p4, %p581_p1 }
  0x25   : > { %p577_p6 = pneg %p576_p10 }
  0x27   : > { %p584_p2 = pnand %p583_p8, %p577_p6 }
  0x29   : > { %587 = shalt.err (!%p584_p2)
}
  0x2a   : > { %s707_s6 = smov 128   ;;  %s708_s7 = smov 8  }
  0x2b   : > { %493 = dma.hbm_to_vmem [thread:$0]  (!%p792_p11), %s951_s1, 2048, %s132_s23, [#allocation6], %s707_s6, %s707_s6, %s708_s7  }
  0x2c   : > { %p33_p1 = scmp.ge.s32.totalorder %s31_s25, 2  ;;  %s38_s16 = sadd.s32 1, %s692_s11 }
  0x2d   : > { %p45_p2 = scmp.ne.s32.totalorder %s692_s11, %s688_s10  ;;  %p46_p4 = scmp.eq.s32.totalorder %s704_s14, 0 }
  0x2e   : > { %s978_s25 = smov (%p33_p1, %s31_s25), 0  ;;  %p964_p8 = scmp.ne.s32.totalorder %s958_s18, 0 }
  0x2f   : > { %p819_p6 = por %p46_p4, %p45_p2  ;;  %s35_s24 = ssub.s32 %s700_s13, %s978_s25 }
  0x30   : > { %p825_p10 = por %p964_p8, %p45_p2  ;;  %p503_p12 = scmp.lt.s32.totalorder %s704_s14, 2 }
  0x31   : > { %p36_p11 = scmp.eq.s32.totalorder %s35_s24, 0  ;;  %s145_s23 = sand.u32 1, %s692_s11  }
  0x32   : > { %s396_s27 = sshll.u32 %s145_s23, 3  ;;  %s397_s29 = sshll.u32 %s700_s13, 7 }
  0x33   : > { %s834_s28 = scalar_select %p36_p11, %s692_s11, %s38_s16  }
  0x34   : > { %s840_s4 = scalar_lea.hbm %s950_s0, %s397_s29  ;;  %s149_s18 = scalar_lea.vmem [#allocation2], %s396_s27 }
  0x35   : > { %s156_s5 = sshll.u32 %s149_s18, 4  ;;  %p846_p13 = pnand %p503_p12, %p819_p6  ;;  %s842_s5 = int_to_ptr.vmem [resolvable:$true] %s156_s5 }
  0x36   : > { %s146_s7 = scalar_lea.sflag [#allocation3], %s145_s23  ;;  %s588_s8 = scalar_lea.hbm %s840_s4, 128 }
  0x37   : > { %p589_p0 = scmp.ne.s32.totalorder %s840_s4, %s588_s8  ;;  %p590_p3 = pneg %p846_p13 }
  0x38   : > { %s593_s24 = scalar_lea.hbm %s950_s0, 256  ;;  %p594_p9 = scmp.lt.u32.totalorder %s840_s4, %s950_s0 }
  0x39   : > { %p591_p5 = pnand %p590_p3, %p589_p0  ;;  %p595_p1 = scmp.lt.u32.totalorder %s593_s24, %s588_s8 }
  0x3a   : > { %p597_p4 = scmp.lt.u32.totalorder %s588_s8, %s840_s4 }
  0x3b   : > { %p592_p7 = pneg %p591_p5  ;;  %p596_p2 = por %p595_p1, %p594_p9 }
  0x3d   : > { %p598_p6 = por %p597_p4, %p596_p2 }
  0x3f   : > { %p599_p8 = pnand %p598_p6, %p592_p7 }
  0x41   : > { %602 = shalt.err (!%p599_p8)
}
  0x42   : > { %s603_s23 = scalar_lea.vmem %s842_s5, 128  ;;  %s709_s29 = smov [#allocation2]  }
  0x43   : > { %p604_p12 = scmp.ne.s32.totalorder %s842_s5, %s603_s23  ;;  %s608_s30 = sshll.u32 %s709_s29, 4  ;;  %s609_s30 = int_to_ptr.vmem [resolvable:$false] %s608_s30 }
  0x44   : > { %s610_s3 = scalar_lea.vmem %s609_s30, 256  ;;  %p611_p5 = scmp.lt.s32.totalorder %s842_s5, %s609_s30 }
  0x45   : > { %p606_p11 = pnand %p604_p12, %p590_p3  ;;  %p612_p9 = scmp.lt.s32.totalorder %s610_s3, %s603_s23 }
  0x47   : > { %p607_p0 = pneg %p606_p11  ;;  %p613_p1 = por %p612_p9, %p611_p5 }
  0x49   : > { %p614_p2 = pnand %p613_p1, %p607_p0 }
  0x4b   : > { %617 = shalt.err (!%p614_p2)
}
  0x4c   : > { %497 = dma.hbm_to_vmem [thread:$0]  (!%p846_p13), %s840_s4, 128, %s842_s5, %s146_s7  }
  0x4d   : > { %p967_p7 = scmp.ne.s32.totalorder %s961_s21, 0 }
  0x4e   : > { %s878_s18 = sand.u32 (!%p967_p7), 1, %s688_s10   ;;  %p968_p3 = scmp.ne.s32.totalorder (!%p967_p7), %s959_s19, 0 }
  0x4f   : > { %165 = sbr.rel (%p967_p7) target bundleno = 383 (0x17f), region = 28  ;;  %s399_s8 = sshll.u32 (!%p967_p7), %s878_s18, 3 }
  0x50   : > { %s168_s15 = scalar_lea.sflag (!%p967_p7), [#allocation3], %s878_s18  ;;  %s884_s16 = scalar_lea.vmem (!%p967_p7), [#allocation2], %s399_s8 }
  0x56   : > { %671 = dma.done.wait (%p968_p3), %s168_s15, 128  }
  0x57   : > { %673 = vsyncadd (%p968_p3), %s168_s15, 4294967168  ;;  %p969_p13 = scmp.ne.s32.totalorder %s957_s17, 0 }
  0x59   : > { %675 = dma.done.wait (%p969_p13), [#allocation6], 2048  }
  0x5a   : > { %677 = vsyncadd (%p969_p13), [#allocation6], 4294965248  ;;  %v710_v0 = vmov 0.0|0.0   ;;  %vm711_vm0 = vmmov 0   ;;  %v712_v1 = vmov 0.0   ;;  %v198_v2 = vld [vmem:[#allocation5] sm:$0xff] }
  0x5b   : > { %458 = vmatprep.subr.bf16.mxu0 %v710_v0  ;;  %455 = vmatprep.mubr.msk.f32.mxu0 %vm711_vm0, %v712_v1  ;;  %v199_v3 = vld [vmem:[#allocation5 + $0x8] sm:$0xff]  ;;  %v200_v5 = vld [vmem:[#allocation5 + $0x10] sm:$0xff]  ;;  %v201_v6 = vld [vmem:[#allocation5 + $0x18] sm:$0xff]  ;;  %s195_s17 = scalar_lea.vmem [#allocation7], %s399_s8  ;;  %s403_s21 = sshll.u32 %s696_s12, 7 }
  0x5c   : > { %v459_v4 = vpack.c.bf16 %v199_v3, %v198_v2  ;;  %v462_v7 = vpack.c.bf16 %v201_v6, %v200_v5  ;;  %v202_v8 = vld [vmem:[#allocation5 + $0x20] sm:$0xff]  ;;  %v203_v9 = vld [vmem:[#allocation5 + $0x28] sm:$0xff]  ;;  %v204_v11 = vld [vmem:[#allocation5 + $0x30] sm:$0xff]  ;;  %s300_s19 = sshll.u32 %s195_s17, 4  ;;  %s903_s6 = scalar_lea.hbm %s952_s2, %s403_s21  ;;  %s898_s19 = int_to_ptr.vmem [resolvable:$true] %s300_s19 }
  0x5d   : > { %v465_v10 = vpack.c.bf16 %v203_v9, %v202_v8  ;;  %v205_v12 = vld [vmem:[#allocation5 + $0x38] sm:$0xff]  ;;  %v206_v14 = vld [vmem:[#allocation5 + $0x40] sm:$0xff]  ;;  %v207_v15 = vld [vmem:[#allocation5 + $0x48] sm:$0xff]  ;;  %s286_s7 = scalar_lea.sflag [#allocation4], %s878_s18  ;;  %s618_s24 = scalar_lea.vmem %s898_s19, 128 }
  0x5e   : > { %460 = vmatpush3.bf16.xpose.msra.mxu0 %v459_v4  ;;  %v468_v13 = vpack.c.bf16 %v205_v12, %v204_v11  ;;  %v471_v16 = vpack.c.bf16 %v207_v15, %v206_v14  ;;  %v208_v17 = vld [vmem:[#allocation5 + $0x50] sm:$0xff]  ;;  %v209_v18 = vld [vmem:[#allocation5 + $0x58] sm:$0xff]  ;;  %v210_v20 = vld [vmem:[#allocation5 + $0x60] sm:$0xff]  ;;  %p619_p4 = scmp.ne.s32.totalorder %s898_s19, %s618_s24  ;;  %s713_s12 = smov [#allocation7]  }
  0x5f   : > { %461 = vmatprep.subr.bf16.mxu0 %v710_v0  ;;  %v474_v19 = vpack.c.bf16 %v209_v18, %v208_v17  ;;  %v211_v21 = vld [vmem:[#allocation5 + $0x68] sm:$0xff]  ;;  %v212_v23 = vld [vmem:[#allocation5 + $0x70] sm:$0xff]  ;;  %v213_v24 = vld [vmem:[#allocation5 + $0x78] sm:$0xff]  ;;  %s622_s22 = sshll.u32 %s713_s12, 4  ;;  %s623_s22 = int_to_ptr.vmem [resolvable:$false] %s622_s22 }
  0x60   : > { %v477_v22 = vpack.c.bf16 %v211_v21, %v210_v20  ;;  %v480_v25 = vpack.c.bf16 %v213_v24, %v212_v23  ;;  %v197_v26 = vld [vmem:[%s884_s16] sm:$0xff]  ;;  %p620_p6 = pnand %p619_p4, %p825_p10  ;;  %s624_s27 = scalar_lea.vmem %s623_s22, 256 }
  0x61   : > { %p625_p12 = scmp.lt.s32.totalorder %s898_s19, %s623_s22  ;;  %p626_p11 = scmp.lt.s32.totalorder %s624_s27, %s618_s24 }
  0x62   : > { %p621_p8 = pneg %p620_p6 }
  0x63   : > { %p627_p0 = por %p626_p11, %p625_p12 }
  0x65   : > { %p628_p5 = pnand %p627_p0, %p621_p8 }
  0x66   : > { %463 = vmatpush3.bf16.xpose.msra.mxu0 %v462_v7 }
  0x67   : > { %464 = vmatprep.subr.bf16.mxu0 %v710_v0 }
  0x6e   : > { %466 = vmatpush3.bf16.xpose.msra.mxu0 %v465_v10 }
  0x6f   : > { %467 = vmatprep.subr.bf16.mxu0 %v710_v0 }
  0x76   : > { %469 = vmatpush3.bf16.xpose.msra.mxu0 %v468_v13 }
  0x77   : > { %470 = vmatprep.subr.bf16.mxu0 %v710_v0 }
  0x7e   : > { %472 = vmatpush3.bf16.xpose.msra.mxu0 %v471_v16 }
  0x7f   : > { %473 = vmatprep.subr.bf16.mxu0 %v710_v0 }
  0x86   : > { %475 = vmatpush3.bf16.xpose.msra.mxu0 %v474_v19 }
  0x87   : > { %476 = vmatprep.subr.bf16.mxu0 %v710_v0 }
  0x8e   : > { %478 = vmatpush3.bf16.xpose.msra.mxu0 %v477_v22 }
  0x8f   : > { %479 = vmatprep.subr.bf16.mxu0 %v710_v0 }
  0x96   : > { %481 = vmatpush3.bf16.xpose.msra.mxu0 %v480_v25 }
  0x9d   : > { %456 = vmatmul.mubr.f32.vlgmr.msra.gmra.mrb[0].mxu0 %v197_v26 }
 0x170   : > { %v280_v27 = vpop.f32.mrb[0].mxu0 }
 0x171   : > { %284 = vst [vmem:[%s195_s17] sm:$0xff] %v280_v27  ;;  %v457_v28 = vpop.f32.mrb[1].mxu0 }
 0x172   : > { %631 = shalt.err (!%p628_p5)
}
 0x173   : > { %s632_s23 = scalar_lea.hbm %s903_s6, 128  ;;  %s636_s3 = scalar_lea.hbm %s952_s2, 256 }
 0x174   : > { %p633_p9 = scmp.ne.s32.totalorder %s903_s6, %s632_s23  ;;  %p637_p7 = scmp.lt.u32.totalorder %s903_s6, %s952_s2 }
 0x175   : > { %p638_p3 = scmp.lt.u32.totalorder %s636_s3, %s632_s23  ;;  %p640_p4 = scmp.lt.u32.totalorder %s632_s23, %s903_s6 }
 0x176   : > { %p634_p1 = pnand %p633_p9, %p825_p10 }
 0x177   : > { %p639_p13 = por %p638_p3, %p637_p7 }
 0x178   : > { %p635_p2 = pneg %p634_p1 }
 0x179   : > { %p641_p6 = por %p640_p4, %p639_p13 }
 0x17b   : > { %p642_p8 = pnand %p641_p6, %p635_p2 }
 0x17d   : > { %645 = shalt.err (!%p642_p8)
}
 0x17e   : > { %488 = dma.vmem_to_hbm [thread:$0]  (%p825_p10), %s898_s19, 128, %s903_s6, %s286_s7  }
 0x17f PF: > { %s312_s15 = sand.u32 1, %s684_s9   ;;  %p970_p12 = scmp.ne.s32.totalorder %s960_s20, 0 }
 0x180   : > { %p971_p11 = scmp.ge.s32.totalorder %s704_s14, 2  ;;  %s313_s16 = scalar_lea.sflag [#allocation4], %s312_s15 }
 0x182   : > { %p499_p0 = pnand %p971_p11, %p970_p12 }
 0x184   : > { %679 = dma.done.wait (!%p499_p0), %s313_s16, 128  }
 0x185   : > { %681 = vsyncadd (!%p499_p0), %s313_s16, 4294967168  ;;  %s19_s14 = sadd.s32 1, %s704_s14   ;;  %s972_s9 = smov %s688_s10 }
 0x186   : > { %p16_p5 = scmp.ge.s32.totalorder %s19_s14, 4   ;;  %s973_s10 = smov %s692_s11 }
 0x187   : > { %s974_s11 = smov %s834_s28  ;;  %s975_s12 = smov %s700_s13 }
 0x188   : > { %s976_s13 = smov %s978_s25  ;;  %18 = sbr.rel (!%p16_p5) target bundleno = 7 (0x7), region = 78 }
 0x18f   :  { %318 = vsyncpa [#allocation3], 1 }
 0x190   :  { %320 = vsyncpa [#allocation3 + $0x1], 1 }
 0x191   :  { %321 = vsyncpa [#allocation6], 1 }
 0x192   :  { %322 = vsyncpa [#allocation4], 1 }
 0x193   :  { %324 = vsyncpa [#allocation4 + $0x1], 1 }

</bundles_post_ra>
